<compile_context>
chip_gen: v7x
topology: tpu7x:2x2x1
jax: 0.10.0
libtpu: 0.0.40
codegen_flags: <defaults>
</compile_context>

<pallas_src>
import jax
import jax.numpy as jnp
from jax.experimental import pallas as pl
from jax.experimental.pallas import tpu as pltpu

_NEG_BIG = -1e30  # finite "minus infinity": safe under exp/max, no inf-inf NaNs


def _round_up(x, m):
    return (x + m - 1) // m * m


def _choose_tv(vocab_size):
    """Lane-dense vocab tile; V_pad == V whenever V is a multiple of 128."""
    if vocab_size % 128 == 0:
        for cand in (512, 384, 256, 128):
            if vocab_size % cand == 0:
                return cand
    return min(512, _round_up(vocab_size, 128))


def mlm_kernel(x_ref, w_ref, b_ref, o_ref, cache_ref, m_sc, l_sc, lse_sc):
    # x_ref: (tm, H) f32       w_ref: (H, tv) bf16    b_ref: (n_v, tv) f32
    # o_ref: (tm, tv)          cache_ref: (n_v, tm, tv) f32
    # m_sc / l_sc / lse_sc: (tm, 1) f32
    p = pl.program_id(1)   # phase: 0 = logits + online logsumexp, 1 = write out
    j = pl.program_id(2)   # vocab tile

    @pl.when(p == 0)
    def _phase0():
        @pl.when(j == 0)
        def _init():
            m_sc[...] = jnp.full_like(m_sc, _NEG_BIG)
            l_sc[...] = jnp.zeros_like(l_sc)

        # bf16 operands, f32 accumulation on the MXU; softmax math stays f32.
        bias_tile = b_ref[pl.ds(j, 1), :]                     # (1, tv)
        logits = jnp.dot(x_ref[...].astype(jnp.bfloat16), w_ref[...],
                         preferred_element_type=jnp.float32) + bias_tile
        cache_ref[j] = logits          # reused in phase 1: no second matmul,
                                       # no second weight stream from HBM.
        m_prev = m_sc[...]
        m_new = jnp.maximum(m_prev, jnp.max(logits, axis=-1, keepdims=True))
        alpha = jnp.exp(m_prev - m_new)
        l_sc[...] = alpha * l_sc[...] + jnp.sum(jnp.exp(logits - m_new),
                                                axis=-1, keepdims=True)
        m_sc[...] = m_new

    @pl.when(p == 1)
    def _phase1():
        @pl.when(j == 0)
        def _finalize():
            # one log per row tile (EUP); reused for every vocab tile
            lse_sc[...] = m_sc[...] + jnp.log(l_sc[...])

        o_ref[...] = (cache_ref[j] - lse_sc[...]).astype(o_ref.dtype)


def prepare_mlm_params(weight, bias):
    """One-time parameter prep (do at init, NOT per forward call).

    PyTorch Linear weight (V, H) -> (H, V_pad) bf16; bias (V,) -> (n_v, tv) f32.
    Padded vocab columns get a very negative bias so they vanish in the softmax.
    """
    V, H = weight.shape
    tv = _choose_tv(V)
    v_pad = _round_up(V, tv)
    w = weight.T.astype(jnp.bfloat16)                      # (H, V)
    b = bias.astype(jnp.float32)                           # (V,)
    if v_pad != V:
        w = jnp.pad(w, ((0, 0), (0, v_pad - V)))
        b = jnp.pad(b, ((0, v_pad - V),), constant_values=_NEG_BIG)
    b = b.reshape(v_pad // tv, tv)                         # (n_v, tv)
    return w, b


def mlm_forward(x, w_hv, b_nt, vocab_size, *, tm=512):
    """x: (B, S, H) float; w_hv: (H, V_pad) bf16; b_nt: (n_v, tv) f32."""
    B, S, H = x.shape
    out_dtype = x.dtype
    V_pad = w_hv.shape[1]
    n_v, tv = b_nt.shape
    assert n_v * tv == V_pad, "weight / bias were not prepared together"

    M = B * S

    # --- VMEM budget, clamped to the physical per-core capacity (v7x: 64 MiB)
    try:
        vmem_cap = pltpu.get_tpu_info().vmem_capacity_bytes
    except Exception:
        vmem_cap = 64 * 1024 * 1024
    vmem_budget = int(0.75 * vmem_cap)

    # Row tile: (a) fit the f32 logits cache in ~1/3 of the budget,
    # (b) don't exceed the (8-rounded) row count, (c) keep >=2 row tiles so the
    # "parallel" row axis can feed both v7x TensorCores for small calls.
    # TODO(synk): for vocabs so large that even tm=8 blows the cache budget,
    # fall back to the recompute-in-phase-1 variant.
    cache_cap_rows = max(8, ((vmem_budget // 3) // (V_pad * 4)) // 8 * 8)
    tm = min(tm, cache_cap_rows)
    tm = min(tm, _round_up(M, 8))
    if M >= 16:
        tm = min(tm, _round_up((M + 1) // 2, 8))
    M_pad = _round_up(M, tm)

    x2d = x.reshape(M, H)
    if M_pad != M:
        x2d = jnp.pad(x2d, ((0, M_pad - M), (0, 0)))   # padded rows sliced off

    grid = (M_pad // tm, 2, n_v)

    # VMEM estimate: double-buffered x / weight / out tiles + resident bias +
    # logits cache + small lse scratch, with headroom; never above the budget.
    est = (2 * (tm * H * 4 + H * tv * 2 + tm * tv * 4)
           + max(n_v, 8) * tv * 4
           + tm * V_pad * 4
           + 3 * tm * 128 * 4
           + 2 * 1024 * 1024)
    vmem_limit = int(min(vmem_budget, max(int(1.5 * est), 16 * 1024 * 1024)))

    out = pl.pallas_call(
        mlm_kernel,
        out_shape=jax.ShapeDtypeStruct((M_pad, V_pad), out_dtype),
        grid_spec=pltpu.PrefetchScalarGridSpec(
            num_scalar_prefetch=0,
            grid=grid,
            in_specs=[
                # x rows: resident across the whole (phase, vocab-tile) subgrid
                pl.BlockSpec((tm, H), lambda i, p, j: (i, 0)),
                # weight column tile: streamed once in phase 0; pinned to the
                # last tile during phase 1 so no weight DMA is issued there.
                pl.BlockSpec((H, tv),
                             lambda i, p, j: (0, (1 - p) * j + p * (n_v - 1))),
                # bias: fully resident (kernel indexes row j itself)
                pl.BlockSpec((n_v, tv), lambda i, p, j: (0, 0)),
            ],
            # Output block pinned at (i, 0) during phase 0 (never written
            # there), advances with j only in phase 1 -> exactly one HBM
            # writeback per block, no garbage flushes.
            out_specs=pl.BlockSpec((tm, tv), lambda i, p, j: (i, p * j)),
            scratch_shapes=[
                pltpu.VMEM((n_v, tm, tv), jnp.float32),  # cached logits
                pltpu.VMEM((tm, 1), jnp.float32),        # running max
                pltpu.VMEM((tm, 1), jnp.float32),        # running sum of exp
                pltpu.VMEM((tm, 1), jnp.float32),        # final logsumexp
            ],
        ),
        compiler_params=pltpu.CompilerParams(
            dimension_semantics=("parallel", "arbitrary", "arbitrary"),
            vmem_limit_bytes=vmem_limit,
        ),
    )(x2d, w_hv, b_nt)

    # Only slice when padding actually happened (the tv/tm choices above make
    # this a no-op for 128-aligned vocabs and tile-aligned row counts).
    if V_pad != vocab_size:
        out = out[:, :vocab_size]
    if M_pad != M:
        out = out[:M]
    return out.reshape(B, S, vocab_size)


if __name__ == "__main__":
    # small shapes consistent with the module
    B, S, H, V = 2, 8, 32, 128   # batch, seq, hidden (BERT output), vocab_size

    key = jax.random.PRNGKey(0)
    kx, kw, kb = jax.random.split(key, 3)
    x = jax.random.normal(kx, (B, S, H), dtype=jnp.float32)
    # nn.Linear parameters in PyTorch layout: weight (V, H), bias (V,)
    weight = jax.random.normal(kw, (V, H), dtype=jnp.float32) * (1.0 / jnp.sqrt(H))
    bias = jax.random.normal(kb, (V,), dtype=jnp.float32) * 0.01

    # init-time prep (stored once), then the forward call
    w_hv, b_nt = prepare_mlm_params(weight, bias)
    out = mlm_forward(x, w_hv, b_nt, V)
    out = jax.block_until_ready(out)

    # reference with matching bf16 matmul operands / f32 accumulation
    ref_logits = jnp.dot(x.reshape(-1, H).astype(jnp.bfloat16),
                         weight.T.astype(jnp.bfloat16),
                         preferred_element_type=jnp.float32) + bias
    ref = jax.nn.log_softmax(ref_logits, axis=-1).reshape(B, S, V)

    assert out.shape == (B, S, V)
    assert jnp.allclose(out, ref, atol=1e-4, rtol=1e-4), \
        float(jnp.max(jnp.abs(out - ref)))

    print("KERNEL_OK")
</pallas_src>

<mosaic_0001>
module attributes {stable_mosaic.version = 11 : i64} {
  func.func @mlm_kernel(%arg0: i32, %arg1: i32, %arg2: i32, %arg3: memref<8x32xf32, #tpu.memory_space<vmem>>, %arg4: memref<32x128xbf16, #tpu.memory_space<vmem>>, %arg5: memref<1x128xf32, #tpu.memory_space<vmem>>, %arg6: memref<8x128xf32, #tpu.memory_space<vmem>>, %arg7: memref<1x8x128xf32, #tpu.memory_space<vmem>>, %arg8: memref<8x1xf32, #tpu.memory_space<vmem>>, %arg9: memref<8x1xf32, #tpu.memory_space<vmem>>, %arg10: memref<8x1xf32, #tpu.memory_space<vmem>>) attributes {dimension_semantics = [#tpu.dimension_semantics<parallel>, #tpu.dimension_semantics<arbitrary>, #tpu.dimension_semantics<arbitrary>], iteration_bounds = array<i64: 2, 2, 1>, scalar_prefetch = 0 : i64, scratch_operands = 4 : i64, tpu.core_type = #tpu.core_type<tc>, window_params = [{transform_indices = @transform_0, window_bounds = array<i64: 8, 32>}, {transform_indices = @transform_1, window_bounds = array<i64: 32, 128>}, {pipeline_mode = #tpu.pipeline_mode<synchronous>, transform_indices = @transform_2, window_bounds = array<i64: 1, 128>}, {transform_indices = @transform_3, window_bounds = array<i64: 8, 128>}]} {
    %c0_i32 = arith.constant 0 : i32
    %0 = arith.cmpi eq, %arg1, %c0_i32 : i32
    %1 = arith.extui %0 : i1 to i32
    %c0_i32_0 = arith.constant 0 : i32
    %2 = arith.cmpi ne, %1, %c0_i32_0 : i32
    scf.if %2 {
      %c0_i32_2 = arith.constant 0 : i32
      %6 = arith.cmpi eq, %arg2, %c0_i32_2 : i32
      %7 = arith.extui %6 : i1 to i32
      %c0_i32_3 = arith.constant 0 : i32
      %8 = arith.cmpi ne, %7, %c0_i32_3 : i32
      scf.if %8 {
        %cst_20 = arith.constant -1.000000e+30 : f32
        %37 = vector.broadcast %cst_20 : f32 to vector<8x1xf32>
        %c0_21 = arith.constant 0 : index
        %c0_22 = arith.constant 0 : index
        %38 = vector.load %arg8[%c0_21, %c0_22] : memref<8x1xf32, #tpu.memory_space<vmem>>, vector<8x1xf32>
        tpu.vector_store %arg8[%c0_21, %c0_22], %37 {strides = array<i32>} : memref<8x1xf32, #tpu.memory_space<vmem>>, vector<8x1xf32>,
        %cst_23 = arith.constant 0.000000e+00 : f32
        %39 = vector.broadcast %cst_23 : f32 to vector<8x1xf32>
        %c0_24 = arith.constant 0 : index
        %c0_25 = arith.constant 0 : index
        %40 = vector.load %arg9[%c0_24, %c0_25] : memref<8x1xf32, #tpu.memory_space<vmem>>, vector<8x1xf32>
        tpu.vector_store %arg9[%c0_24, %c0_25], %39 {strides = array<i32>} : memref<8x1xf32, #tpu.memory_space<vmem>>, vector<8x1xf32>,
      } else {
      }
      %9 = arith.index_cast %arg2 : i32 to index
      %c0 = arith.constant 0 : index
      %10 = vector.load %arg5[%9, %c0] : memref<1x128xf32, #tpu.memory_space<vmem>>, vector<1x128xf32>
      %c0_4 = arith.constant 0 : index
      %c0_5 = arith.constant 0 : index
      %11 = vector.load %arg3[%c0_4, %c0_5] : memref<8x32xf32, #tpu.memory_space<vmem>>, vector<8x32xf32>
      %12 = arith.truncf %11 : vector<8x32xf32> to vector<8x32xbf16>
      %c0_6 = arith.constant 0 : index
      %c0_7 = arith.constant 0 : index
      %13 = vector.load %arg4[%c0_6, %c0_7] : memref<32x128xbf16, #tpu.memory_space<vmem>>, vector<32x128xbf16>
      %cst = arith.constant dense<0.000000e+00> : vector<8x128xf32>
      %14 = tpu.matmul %12, %13, %cst {dimension_numbers = #tpu.dot_dimension_numbers<[1], [0], [0], [1], [0, 0, 1, 1], [], []>} : vector<8x32xbf16>, vector<32x128xbf16>, vector<8x128xf32> -> vector<8x128xf32>
      %15 = vector.broadcast %10 : vector<1x128xf32> to vector<8x128xf32>
      %16 = arith.addf %14, %15 : vector<8x128xf32>
      %17 = arith.index_cast %arg2 : i32 to index
      %c0_8 = arith.constant 0 : index
      %c0_9 = arith.constant 0 : index
      %18 = vector.load %arg7[%17, %c0_8, %c0_9] : memref<1x8x128xf32, #tpu.memory_space<vmem>>, vector<1x8x128xf32>
      %19 = vector.shape_cast %18 : vector<1x8x128xf32> to vector<8x128xf32>
      %20 = vector.shape_cast %16 : vector<8x128xf32> to vector<1x8x128xf32>
      tpu.vector_store %arg7[%17, %c0_8, %c0_9], %20 {strides = array<i32>} : memref<1x8x128xf32, #tpu.memory_space<vmem>>, vector<1x8x128xf32>,
      %c0_10 = arith.constant 0 : index
      %c0_11 = arith.constant 0 : index
      %21 = vector.load %arg8[%c0_10, %c0_11] : memref<8x1xf32, #tpu.memory_space<vmem>>, vector<8x1xf32>
      %cst_12 = arith.constant dense<0xFF800000> : vector<8xf32>
      %22 = vector.multi_reduction <maximumf>, %16, %cst_12 [1] : vector<8x128xf32> to vector<8xf32>
      %23 = vector.shape_cast %22 : vector<8xf32> to vector<8x1xf32>
      %24 = arith.maximumf %21, %23 : vector<8x1xf32>
      %25 = arith.subf %21, %24 : vector<8x1xf32>
      %26 = math.exp %25 : vector<8x1xf32>
      %c0_13 = arith.constant 0 : index
      %c0_14 = arith.constant 0 : index
      %27 = vector.load %arg9[%c0_13, %c0_14] : memref<8x1xf32, #tpu.memory_space<vmem>>, vector<8x1xf32>
      %28 = arith.mulf %26, %27 : vector<8x1xf32>
      %29 = vector.broadcast %24 : vector<8x1xf32> to vector<8x128xf32>
      %30 = arith.subf %16, %29 : vector<8x128xf32>
      %31 = math.exp %30 : vector<8x128xf32>
      %cst_15 = arith.constant dense<0.000000e+00> : vector<8xf32>
      %32 = vector.multi_reduction <add>, %31, %cst_15 [1] : vector<8x128xf32> to vector<8xf32>
      %33 = vector.shape_cast %32 : vector<8xf32> to vector<8x1xf32>
      %34 = arith.addf %28, %33 : vector<8x1xf32>
      %c0_16 = arith.constant 0 : index
      %c0_17 = arith.constant 0 : index
      %35 = vector.load %arg9[%c0_16, %c0_17] : memref<8x1xf32, #tpu.memory_space<vmem>>, vector<8x1xf32>
      tpu.vector_store %arg9[%c0_16, %c0_17], %34 {strides = array<i32>} : memref<8x1xf32, #tpu.memory_space<vmem>>, vector<8x1xf32>,
      %c0_18 = arith.constant 0 : index
      %c0_19 = arith.constant 0 : index
      %36 = vector.load %arg8[%c0_18, %c0_19] : memref<8x1xf32, #tpu.memory_space<vmem>>, vector<8x1xf32>
      tpu.vector_store %arg8[%c0_18, %c0_19], %24 {strides = array<i32>} : memref<8x1xf32, #tpu.memory_space<vmem>>, vector<8x1xf32>,
    } else {
    }
    %c1_i32 = arith.constant 1 : i32
    %3 = arith.cmpi eq, %arg1, %c1_i32 : i32
    %4 = arith.extui %3 : i1 to i32
    %c0_i32_1 = arith.constant 0 : i32
    %5 = arith.cmpi ne, %4, %c0_i32_1 : i32
    scf.if %5 {
      %c0_i32_2 = arith.constant 0 : i32
      %6 = arith.cmpi eq, %arg2, %c0_i32_2 : i32
      %7 = arith.extui %6 : i1 to i32
      %c0_i32_3 = arith.constant 0 : i32
      %8 = arith.cmpi ne, %7, %c0_i32_3 : i32
      scf.if %8 {
        %c0_9 = arith.constant 0 : index
        %c0_10 = arith.constant 0 : index
        %16 = vector.load %arg8[%c0_9, %c0_10] : memref<8x1xf32, #tpu.memory_space<vmem>>, vector<8x1xf32>
        %c0_11 = arith.constant 0 : index
        %c0_12 = arith.constant 0 : index
        %17 = vector.load %arg9[%c0_11, %c0_12] : memref<8x1xf32, #tpu.memory_space<vmem>>, vector<8x1xf32>
        %18 = math.log %17 : vector<8x1xf32>
        %19 = arith.addf %16, %18 : vector<8x1xf32>
        %c0_13 = arith.constant 0 : index
        %c0_14 = arith.constant 0 : index
        %20 = vector.load %arg10[%c0_13, %c0_14] : memref<8x1xf32, #tpu.memory_space<vmem>>, vector<8x1xf32>
        tpu.vector_store %arg10[%c0_13, %c0_14], %19 {strides = array<i32>} : memref<8x1xf32, #tpu.memory_space<vmem>>, vector<8x1xf32>,
      } else {
      }
      %9 = arith.index_cast %arg2 : i32 to index
      %c0 = arith.constant 0 : index
      %c0_4 = arith.constant 0 : index
      %10 = vector.load %arg7[%9, %c0, %c0_4] : memref<1x8x128xf32, #tpu.memory_space<vmem>>, vector<1x8x128xf32>
      %11 = vector.shape_cast %10 : vector<1x8x128xf32> to vector<8x128xf32>
      %c0_5 = arith.constant 0 : index
      %c0_6 = arith.constant 0 : index
      %12 = vector.load %arg10[%c0_5, %c0_6] : memref<8x1xf32, #tpu.memory_space<vmem>>, vector<8x1xf32>
      %13 = vector.broadcast %12 : vector<8x1xf32> to vector<8x128xf32>
      %14 = arith.subf %11, %13 : vector<8x128xf32>
      %c0_7 = arith.constant 0 : index
      %c0_8 = arith.constant 0 : index
      %15 = vector.load %arg6[%c0_7, %c0_8] : memref<8x128xf32, #tpu.memory_space<vmem>>, vector<8x128xf32>
      tpu.vector_store %arg6[%c0_7, %c0_8], %14 {strides = array<i32>} : memref<8x128xf32, #tpu.memory_space<vmem>>, vector<8x128xf32>,
    } else {
    }
    return
  }
  func.func @transform_0(%arg0: i32, %arg1: i32, %arg2: i32) -> (i32, i32) {
    %c0_i32 = arith.constant 0 : i32
    %c0_i32_0 = arith.constant 0 : i32
    return %arg0, %c0_i32 : i32, i32
  }
  func.func @transform_1(%arg0: i32, %arg1: i32, %arg2: i32) -> (i32, i32) {
    %c1_i32 = arith.constant 1 : i32
    %0 = arith.subi %c1_i32, %arg1 : i32
    %1 = arith.muli %0, %arg2 : i32
    %c0_i32 = arith.constant 0 : i32
    %2 = arith.muli %arg1, %c0_i32 : i32
    %3 = arith.addi %1, %2 : i32
    %c0_i32_0 = arith.constant 0 : i32
    %c0_i32_1 = arith.constant 0 : i32
    return %c0_i32_0, %3 : i32, i32
  }
  func.func @transform_2(%arg0: i32, %arg1: i32, %arg2: i32) -> (i32, i32) {
    %c0_i32 = arith.constant 0 : i32
    %c0_i32_0 = arith.constant 0 : i32
    %c0_i32_1 = arith.constant 0 : i32
    return %c0_i32, %c0_i32_0 : i32, i32
  }
  func.func @transform_3(%arg0: i32, %arg1: i32, %arg2: i32) -> (i32, i32) {
    %0 = arith.muli %arg1, %arg2 : i32
    %c0_i32 = arith.constant 0 : i32
    return %arg0, %0 : i32, i32
  }
}

</mosaic_0001>

<bundles_post_ra>
// kernel: tpu_custom_call.1
= control target key start
LH: loop header
LB: loop body
LE: loop exit
PB: predicated region body
PF: predicated region fallthrough
CT: control target
= control target key end

     0   :  { %8 = vsyncpa [#allocation7], 0  ;;  %s1090_s0 = inlined_call_operand.hbm [shape: f32[16,32], index: 0, kind: input, shape index: {}]   ;;  %s1091_s1 = inlined_call_operand.hbm [shape: bf16[32,128], index: 1, kind: input, shape index: {}]   ;;  %s1092_s2 = inlined_call_operand.vmem [shape: f32[1,128], index: 2, kind: input, shape index: {}]   ;;  %s1093_s3 = inlined_call_operand.hbm [shape: f32[16,128], index: 3, kind: output, shape index: {}]  }
   0x1   :  { %10 = vsyncpa [#allocation7 + $0x1], 0 }
   0x2   :  { %11 = vsyncpa [#allocation10], 0 }
   0x3   :  { %13 = vsyncpa [#allocation10 + $0x1], 0 }
   0x4   :  { %14 = vsyncpa [#allocation8], 0 }
   0x5   :  { %16 = vsyncpa [#allocation8 + $0x1], 0  ;;  %s849_s12 = smov 0   ;;  %s851_s13 = smov 0  }
   0x6   :  { %s853_s14 = smov 0   ;;  %s855_s15 = smov 0  }
   0x7   :  { %s857_s16 = smov 0   ;;  %s859_s17 = smov 0  }
   0x8   :  { %s861_s18 = smov 0   ;;  %s863_s19 = smov 0  }
   0x9 LB: > { %s520_s20 = sadd.s32 4294967295, %s817_s19   ;;  %s521_s21 = sadd.s32 4294967294, %s817_s19   ;;  %s817_s19 = sphi %s863_s19, %s22_s19   ;;  %s813_s18 = sphi %s861_s18, %s1123_s18   ;;  %s809_s17 = sphi %s859_s17, %s1122_s17   ;;  %s805_s16 = sphi %s857_s16, %s1121_s16   ;;  %s801_s15 = sphi %s855_s15, %s1120_s15   ;;  %s797_s14 = sphi %s853_s14, %s1119_s14   ;;  %s793_s13 = sphi %s851_s13, %s1118_s13   ;;  %s789_s12 = sphi %s849_s12, %s1117_s12  }
   0xa   : > { %s37_s22 = sadd.s32 1, %s809_s17  ;;  %s41_s23 = sadd.s32 1, %s813_s18 }
   0xb   : > { %p39_p0 = scmp.ge.s32.totalorder %s37_s22, 2  ;;  %s48_s24 = sadd.s32 1, %s797_s14 }
   0xc   : > { %p55_p1 = scmp.ne.s32.totalorder %s797_s14, %s793_s13  ;;  %p1095_p2 = scmp.eq.s32.totalorder %s817_s19, 0 }
   0xd   : > { %s1125_s22 = smov (%p39_p0, %s37_s22), 0  ;;  %s1127_s23 = smov (!%p39_p0, %s41_s23), %s813_s18 }
   0xe   : > { %p902_p3 = por %p1095_p2, %p55_p1  ;;  %p61_p4 = scmp.ne.s32.totalorder %s793_s13, %s789_s12 }
   0xf   : > { %p43_p5 = scmp.ge.s32.totalorder %s1127_s23, 2  ;;  %p908_p6 = scmp.eq.s32.totalorder %s520_s20, 0 }
  0x10   : > { %p140_p7 = scmp.eq.s32.totalorder %s520_s20, 3  ;;  %p146_p8 = scmp.eq.s32.totalorder %s521_s21, 3 }
  0x11   : > { %s1101_s26 = scalar_select %p908_p6, 1, 0 }
  0x12   : > { %s1129_s23 = smov (%p43_p5, %s1127_s23), 0  ;;  %p916_p9 = por %p908_p6, %p61_p4 }
  0x13   : > { %p920_p10 = por %p140_p7, %p55_p1  ;;  %s45_s29 = ssub.s32 %s813_s18, %s1129_s23 }
  0x14   : > { %s1102_s27 = scalar_select %p916_p9, 1, 0 }
  0x15   : > { %s1103_s28 = scalar_select %p920_p10, 1, 0 }
  0x16   : > { %p926_p11 = por %p146_p8, %p61_p4  ;;  %p46_p12 = scmp.eq.s32.totalorder %s45_s29, 0 }
  0x17   : > { %p1094_p13 = scmp.lt.s32.totalorder %s817_s19, 4  ;;  %s169_s4 = sand.u32 1, %s797_s14  }
  0x18   : > { %s1104_s30 = scalar_select %p926_p11, 1, 0 }
  0x19   : > { %s933_s5 = scalar_select %p46_p12, %s797_s14, %s48_s24  }
  0x1a   : > { %s524_s6 = sshll.u32 %s169_s4, 3  ;;  %s525_s7 = sshll.u32 %s813_s18, 7 }
  0x1b   : > { %s939_s10 = scalar_lea.hbm %s1090_s0, %s525_s7  ;;  %s173_s11 = scalar_lea.vmem [#allocation6], %s524_s6 }
  0x1c   : > { %s180_s20 = sshll.u32 %s173_s11, 4  ;;  %p947_p0 = pnand %p1094_p13, %p902_p3  ;;  %s941_s20 = int_to_ptr.vmem [resolvable:$true] %s180_s20 }
  0x1d   : > { %s170_s24 = scalar_lea.sflag [#allocation7], %s169_s4  ;;  %s657_s29 = scalar_lea.hbm %s939_s10, 128 }
  0x1e   : > { %p658_p5 = scmp.ne.s32.totalorder %s939_s10, %s657_s29  ;;  %p659_p7 = pneg %p947_p0 }
  0x1f   : > { %s662_s7 = scalar_lea.hbm %s1090_s0, 256  ;;  %p663_p3 = scmp.lt.u32.totalorder %s939_s10, %s1090_s0 }
  0x20   : > { %p660_p8 = pnand %p659_p7, %p658_p5  ;;  %p664_p13 = scmp.lt.u32.totalorder %s662_s7, %s657_s29 }
  0x21   : > { %p666_p1 = scmp.lt.u32.totalorder %s657_s29, %s939_s10 }
  0x22   : > { %p661_p12 = pneg %p660_p8  ;;  %p665_p2 = por %p664_p13, %p663_p3 }
  0x24   : > { %p667_p4 = por %p666_p1, %p665_p2 }
  0x26   : > { %p668_p11 = pnand %p667_p4, %p661_p12 }
  0x28   : > { %671 = shalt.err (!%p668_p11)
}
  0x29   : > { %s672_s4 = scalar_lea.vmem %s941_s20, 128  ;;  %s819_s11 = smov [#allocation6]  }
  0x2a   : > { %p673_p5 = scmp.ne.s32.totalorder %s941_s20, %s672_s4  ;;  %s677_s6 = sshll.u32 %s819_s11, 4  ;;  %s678_s6 = int_to_ptr.vmem [resolvable:$false] %s677_s6 }
  0x2b   : > { %s679_s25 = scalar_lea.vmem %s678_s6, 256  ;;  %p680_p6 = scmp.lt.s32.totalorder %s941_s20, %s678_s6 }
  0x2c   : > { %p675_p8 = pnand %p673_p5, %p659_p7  ;;  %p681_p13 = scmp.lt.s32.totalorder %s679_s25, %s672_s4 }
  0x2e   : > { %p676_p10 = pneg %p675_p8  ;;  %p682_p3 = por %p681_p13, %p680_p6 }
  0x30   : > { %p683_p2 = pnand %p682_p3, %p676_p10 }
  0x32   : > { %686 = shalt.err (!%p683_p2)
}
  0x33   : > { %563 = dma.hbm_to_vmem [thread:$0]  (!%p947_p0), %s939_s10, 128, %s941_s20, %s170_s24  }
  0x34   : > { %p1106_p11 = scmp.lt.s32.totalorder %s817_s19, 5  ;;  %p1107_p1 = scmp.ge.s32.totalorder %s817_s19, 1 }
  0x35   : > { %s820_s7 = smov [#allocation9]   ;;  %p1109_p6 = scmp.eq.s32.totalorder %s817_s19, 0 }
  0x36   : > { %p982_p4 = pnand %p1107_p1, %p1106_p11  ;;  %s199_s8 = sshll.u32 %s820_s7, 4  ;;  %s200_s8 = int_to_ptr.vmem [resolvable:$true] %s199_s8 }
  0x37   : > { %p1110_p10 = scmp.lt.s32.totalorder %s817_s19, 4  ;;  %s687_s10 = scalar_lea.hbm %s1091_s1, 256 }
  0x38   : > { %s1108_s29 = scalar_select %p982_p4, 1, 0 }
  0x39   : > { %p990_p7 = pnand %p1110_p10, %p1109_p6  ;;  %p688_p0 = scmp.ne.s32.totalorder %s1091_s1, %s687_s10 }
  0x3a   : > { %p694_p13 = scmp.lt.u32.totalorder %s687_s10, %s1091_s1 }
  0x3b   : > { %p689_p12 = pneg %p990_p7 }
  0x3d   : > { %p690_p5 = pnand %p689_p12, %p688_p0 }
  0x3f   : > { %p691_p8 = pneg %p690_p5 }
  0x41   : > { %p696_p3 = pnand %p694_p13, %p691_p8 }
  0x43   : > { %699 = shalt.err (!%p696_p3)
}
  0x44   : > { %s700_s25 = scalar_lea.vmem %s200_s8, 256  ;;  %s707_s7 = scalar_lea.vmem %s200_s8, 512 }
  0x45   : > { %p701_p2 = scmp.ne.s32.totalorder %s200_s8, %s700_s25  ;;  %p708_p6 = scmp.lt.s32.totalorder %s200_s8, %s200_s8 }
  0x46   : > { %p709_p10 = scmp.lt.s32.totalorder %s707_s7, %s700_s25 }
  0x47   : > { %p703_p11 = pnand %p701_p2, %p689_p12 }
  0x48   : > { %p710_p9 = por %p709_p10, %p708_p6 }
  0x49   : > { %p704_p1 = pneg %p703_p11 }
  0x4b   : > { %p711_p4 = pnand %p710_p9, %p704_p1 }
  0x4d   : > { %714 = shalt.err (!%p711_p4)
}
  0x4e   : > { %s821_s21 = smov 64   ;;  %s822_s4 = smov 4  }
  0x4f   : > { %566 = dma.hbm_to_vmem [thread:$0]  (!%p990_p7), %s1091_s1, 256, %s200_s8, [#allocation10], %s821_s21, %s821_s21, %s822_s4  }
  0x50   : > { %p1112_p0 = scmp.ne.s32.totalorder %s1108_s29, 0 }
  0x51   : > { %s1013_s10 = sand.u32 (!%p1112_p0), 1, %s793_s13   ;;  %p1113_p9 = scmp.ne.s32.totalorder (!%p1112_p0), %s1102_s27, 0 }
  0x52   : > { %211 = sbr.rel (%p1112_p0) target bundleno = 935 (0x3a7), region = 32  ;;  %s528_s11 = sshll.u32 (!%p1112_p0), %s1013_s10, 3 }
  0x53   : > { %s214_s6 = scalar_lea.sflag (!%p1112_p0), [#allocation7], %s1013_s10  ;;  %s217_s25 = scalar_lea.vmem (!%p1112_p0), [#allocation6], %s528_s11 }
  0x59   : > { %776 = dma.done.wait (%p1113_p9), %s214_s6, 128  }
  0x5a   : > { %778 = vsyncadd (%p1113_p9), %s214_s6, 4294967168  ;;  %p1114_p4 = scmp.ne.s32.totalorder %s1101_s26, 0 }
  0x5c   : > { %780 = dma.done.wait (%p1114_p4), [#allocation10], 256  }
  0x5d   : > { %782 = vsyncadd (%p1114_p4), [#allocation10], 4294967040  ;;  %s1025_s29 = scalar_lea.vmem [#allocation11], %s528_s11  ;;  %p531_p7 = scmp.ne.s32.totalorder %s801_s15, 0 }
  0x5e   : > { %vm266_vm0 = vcmask (!%p531_p7), 7168   ;;  %v823_v0 = vmov (!%p531_p7), 0.0   ;;  %v648_v1 = vld [vmem:[#allocation9] sm:$0xff] (!%p531_p7)   ;;  %vm824_vm1 = vmmov (!%p531_p7), 0   ;;  %v649_v2 = vld [vmem:[#allocation9 + $0x8] sm:$0xff] (!%p531_p7)   ;;  %v271_v3 = vld [vmem:[%s217_s25] sm:$0xff] (!%p531_p7) }
  0x5f   : > { %261 = sbr.rel (%p531_p7) target bundleno = 749 (0x2ed), region = 44  ;;  %268 = vst.msk [vmem:[#allocation4] sm:$0xff] (!%p531_p7), %vm266_vm0, %v823_v0  ;;  %544 = vmatprep.subr.bf16.mxu0 (!%p531_p7), %v823_v0  ;;  %548 = vmatprep.mubr.msk.bf16.mxu0 (!%p531_p7), %vm824_vm1, %v823_v0  ;;  %v272_v4 = vpack.c.bf16 (!%p531_p7), %v271_v3, %v271_v3  ;;  %vm295_vm2 = vcmask (!%p531_p7), 261120   ;;  %v532_v5 = vld [vmem:[%s1092_s2] ss:$0 sm:$0xff] (!%p531_p7)  ;;  %v826_v12 = vmov (!%p531_p7), 0  }
  0x60   : > { %545 = vmatpush3.bf16.msra.mxu0 (!%p531_p7), %v648_v1  ;;  %v825_v11 = vmov (!%p531_p7), -1e+30   ;;  %647 = vset.pattern.permute.xlu0 (!%p531_p7), %v826_v12 }
  0x61   : > { %546 = vmatprep.subr.bf16.mxu0 (!%p531_p7), %v823_v0  ;;  %267 = vst.msk [vmem:[#allocation3] sm:$0xff] (!%p531_p7), %vm266_vm0, %v825_v11 }
  0x64   : > { %547 = vmatpush3.bf16.msra.mxu0 (!%p531_p7), %v649_v2 }
  0x66   : > { %v349_v23 = vld [vmem:[#allocation4] sm:$0xff] }
  0x67   : > { %549 = vmatmul.mubr.msk.bf16.vlgmr.msra.gmra.mrb[0].mxu0 %vm295_vm2, %v272_v4 }
  0x68   : > { %v342_v13 = vld [vmem:[#allocation3] sm:$0xff] }
 0x13a   : > { %v333_v6 = vpop.f32.mrb[0].mxu0 }
 0x13b   : > { %v334_v7 = vadd.f32 %v532_v5, %v333_v6  ;;  %v550_v8 = vpop.f32.mrb[1].mxu0 }
 0x13c   : > { %v336_v9 = vpop.f32.mrb[2].mxu0 }
 0x13d   : > { %341 = vst [vmem:[#allocation2] sm:$0xff] %v334_v7  ;;  %343 = vmax.xlane.f32.xlu0 %v334_v7  ;;  %v551_v10 = vpop.f32.mrb[3].mxu0 }
 0x1ca   : > { %v344_v14 = vpop.xlane.xlu0 %343 }
 0x1cb   : > { %v345_v15 = vmax.f32 %v342_v13, %v344_v14 }
 0x1cd   : > { %v346_v16 = vsub.f32 %v342_v13, %v345_v15  ;;  %364 = vst.msk [vmem:[#allocation3] sm:$0xff] %vm266_vm0, %v345_v15  ;;  %353 = vperm.xlu0 %647, %v345_v15  }
 0x1cf   : > { %v347_v21 = vmul.f32 1.442695, %v346_v16 }
 0x24c   : > { %v354_v17 = vpop.permute.xlu0 %353 }
 0x24d   : > { %v356_v18 = vsub.f32 %v334_v7, %v354_v17 }
 0x24f   : > { %v357_v19 = vmul.f32 1.442695, %v356_v18 }
 0x251   : > { %650 = vpow2.f32 %v357_v19 }
 0x252   : > { %652 = vpow2.f32 %v347_v21 }
 0x25b   : > { %v651_v20 = vpop.eup %650 }
 0x25c   : > { %359 = vadd.xlane.f32.xlu1 %v651_v20  ;;  %v653_v22 = vpop.eup %652 }
 0x25d   : > { %v350_v24 = vmul.f32 %v653_v22, %v349_v23 }
 0x2e9   : > { %v360_v25 = vpop.xlane.xlu1 %359 }
 0x2ea   : > { %v361_v26 = vadd.f32 %v360_v25, %v350_v24 }
 0x2ec   : > { %363 = vst.msk [vmem:[#allocation4] sm:$0xff] %vm266_vm0, %v361_v26 }
 0x2ed PF: > { %p536_p12 = scmp.ne.s32.totalorder %s801_s15, 1 }
 0x2ee   : > { %v827_v28 = vmov (!%p536_p12), 0   ;;  %vm378_vm3 = vcmask (!%p536_p12), 7168   ;;  %v382_v34 = vld [vmem:[#allocation2] sm:$0xff] (!%p536_p12) }
 0x2ef   : > { %368 = sbr.rel (%p536_p12) target bundleno = 910 (0x38e), region = 52  ;;  %654 = vset.pattern.permute.xlu0 (!%p536_p12), %v827_v28  ;;  %v373_v30 = vld [vmem:[#allocation3] sm:$0xff] (!%p536_p12) }
 0x2f3   : > { %v374_v27 = vld [vmem:[#allocation4] sm:$0xff] (!%p536_p12) }
 0x2f4   : > { %655 = vlog2.f32 (!%p536_p12), %v374_v27 }
 0x2fe   : > { %v656_v29 = vpop.eup %655 }
 0x2ff   : > { %v376_v31 = vmul.f32 0.6931472, %v656_v29 }
 0x301   : > { %v377_v32 = vadd.f32 %v376_v31, %v373_v30 }
 0x303   : > { %379 = vst.msk [vmem:[#allocation5] sm:$0xff] %vm378_vm3, %v377_v32 }
 0x30a   : > { %v383_v33 = vld [vmem:[#allocation5] sm:$0xff] }
 0x30b   : > { %386 = vperm.xlu0 %654, %v383_v33  }
 0x38a   : > { %v387_v35 = vpop.permute.xlu0 %386 }
 0x38b   : > { %v389_v36 = vsub.f32 %v382_v34, %v387_v35 }
 0x38d   : > { %390 = vst [vmem:[%s1025_s29] sm:$0xff] %v389_v36 }
 0x38e PF: > { %s538_s15 = sshll.u32 %s805_s16, 7  ;;  %s407_s21 = sshll.u32 %s1025_s29, 4  ;;  %s408_s21 = int_to_ptr.vmem [resolvable:$true] %s407_s21 }
 0x38f   : > { %s1041_s7 = scalar_lea.hbm %s1093_s3, %s538_s15  ;;  %s392_s4 = scalar_lea.sflag [#allocation8], %s1013_s10 }
 0x390   : > { %s715_s20 = scalar_lea.vmem %s408_s21, 128  ;;  %p1115_p8 = scmp.ne.s32.totalorder %s1103_s28, 0 }
 0x391   : > { %p716_p5 = scmp.ne.s32.totalorder %s408_s21, %s715_s20  ;;  %s828_s24 = smov [#allocation11]  }
 0x392   : > { %s719_s11 = sshll.u32 %s828_s24, 4  ;;  %s720_s11 = int_to_ptr.vmem [resolvable:$false] %s719_s11 }
 0x393   : > { %p717_p13 = pnand %p716_p5, %p1115_p8  ;;  %s721_s6 = scalar_lea.vmem %s720_s11, 256 }
 0x394   : > { %p722_p2 = scmp.lt.s32.totalorder %s408_s21, %s720_s11  ;;  %p723_p11 = scmp.lt.s32.totalorder %s721_s6, %s715_s20 }
 0x395   : > { %p718_p3 = pneg %p717_p13 }
 0x396   : > { %p724_p1 = por %p723_p11, %p722_p2 }
 0x398   : > { %p725_p6 = pnand %p724_p1, %p718_p3 }
 0x39a   : > { %728 = shalt.err (!%p725_p6)
}
 0x39b   : > { %s729_s16 = scalar_lea.hbm %s1041_s7, 128  ;;  %s733_s29 = scalar_lea.hbm %s1093_s3, 256 }
 0x39c   : > { %p730_p10 = scmp.ne.s32.totalorder %s1041_s7, %s729_s16  ;;  %p734_p4 = scmp.lt.u32.totalorder %s1041_s7, %s1093_s3 }
 0x39d   : > { %p735_p7 = scmp.lt.u32.totalorder %s733_s29, %s729_s16  ;;  %p737_p5 = scmp.lt.u32.totalorder %s729_s16, %s1041_s7 }
 0x39e   : > { %p731_p0 = pnand %p730_p10, %p1115_p8 }
 0x39f   : > { %p736_p12 = por %p735_p7, %p734_p4 }
 0x3a0   : > { %p732_p9 = pneg %p731_p0 }
 0x3a1   : > { %p738_p13 = por %p737_p5, %p736_p12 }
 0x3a3   : > { %p739_p3 = pnand %p738_p13, %p732_p9 }
 0x3a5   : > { %742 = shalt.err (!%p739_p3)
}
 0x3a6   : > { %558 = dma.vmem_to_hbm [thread:$0]  (%p1115_p8), %s408_s21, 128, %s1041_s7, %s392_s4  }
 0x3a7 PF: > { %p574_p2 = scmp.ge.s32.totalorder %s817_s19, 2  ;;  %s419_s15 = sand.u32 1, %s789_s12  }
 0x3a8   : > { %p1116_p11 = scmp.ne.s32.totalorder %s1104_s30, 0  ;;  %s420_s8 = scalar_lea.sflag [#allocation8], %s419_s15 }
 0x3aa   : > { %p568_p1 = pnand %p574_p2, %p1116_p11 }
 0x3ac   : > { %784 = dma.done.wait (!%p568_p1), %s420_s8, 128  }
 0x3ad   : > { %786 = vsyncadd (!%p568_p1), %s420_s8, 4294967168  ;;  %s22_s19 = sadd.s32 1, %s817_s19   ;;  %s1117_s12 = smov %s793_s13 }
 0x3ae   : > { %p19_p6 = scmp.ge.s32.totalorder %s22_s19, 6   ;;  %s1118_s13 = smov %s797_s14 }
 0x3af   : > { %s1119_s14 = smov %s933_s5  ;;  %s1120_s15 = smov %s809_s17 }
 0x3b0   : > { %s1121_s16 = smov %s813_s18  ;;  %s1122_s17 = smov %s1125_s22 }
 0x3b1   : > { %s1123_s18 = smov %s1129_s23  ;;  %21 = sbr.rel (!%p19_p6) target bundleno = 9 (0x9), region = 109 }
 0x3b8   :  { %425 = vsyncpa [#allocation7], 1 }
 0x3b9   :  { %427 = vsyncpa [#allocation7 + $0x1], 1 }
 0x3ba   :  { %428 = vsyncpa [#allocation10], 1 }
 0x3bb   :  { %430 = vsyncpa [#allocation10 + $0x1], 1 }
 0x3bc   :  { %431 = vsyncpa [#allocation8], 1 }
 0x3bd   :  { %433 = vsyncpa [#allocation8 + $0x1], 1 }

</bundles_post_ra>
